<compile_context>
chip_gen: v5e
topology: v5e:2x2
jax: 0.10.0
libtpu: 0.0.40
codegen_flags: <defaults>
</compile_context>

<pallas_src>
import functools

import jax
import jax.numpy as jnp
from jax.experimental import pallas as pl
from jax.experimental.pallas import tpu as pltpu


# ----------------------------------------------------------------------------- helpers
def _round_up(x, m):
    return ((x + m - 1) // m) * m


def _round_down(x, m):
    return (x // m) * m


def _vmem_physical_bytes():
    """Trace-time VMEM capacity query; conservative default if unavailable."""
    try:
        return int(pltpu.get_tpu_info().vmem_capacity_bytes)
    except Exception:
        return 64 * 1024 * 1024  # v7x per-TC size -> picks the conservative 48 MiB cap


def _vmem_footprint_bytes(tile_n, in_feats, hidden, o_pad):
    """Rough VMEM need: pipelined x/out buffers + single-buffered residents + temps."""
    x_bufs = 2 * tile_n * in_feats * 4                     # streamed f32 x, double-buffered
    out_bufs = 2 * tile_n * o_pad * 4                      # f32 output tiles, double-buffered
    residents = (in_feats * hidden * 2 + hidden * 4        # w1 bf16 + b1 f32 (Buffered(1))
                 + hidden * o_pad * 2 + o_pad * 4)         # w2 bf16 + b2 f32 (Buffered(1))
    # in-kernel temporaries: bf16 x, f32 h, bf16 h, f32 logits + softmax temps
    scratch = tile_n * (in_feats * 2 + hidden * (4 + 2) + o_pad * 4 * 2)
    return x_bufs + out_bufs + residents + scratch


def _choose_tile_n(n, in_feats, hidden, o_pad, vmem_cap):
    """Byte-sized batch tile: ~2 MiB x blocks, VMEM-bounded, MXU/sublane aligned."""
    per_row = (2 * in_feats * 4) + (2 * o_pad * 4) + (in_feats * 2) \
        + hidden * (4 + 2) + (o_pad * 4 * 2)
    residents = in_feats * hidden * 2 + hidden * 4 + hidden * o_pad * 2 + o_pad * 4
    budget = vmem_cap - residents - (4 << 20)              # headroom for compiler scratch
    if budget <= per_row * 8:
        # TODO(synk): hidden-blocked (K-reduction) fallback for very large layers.
        raise ValueError("MLPPredictor weights too large for the single-pass kernel; "
                         "a hidden-blocked fallback is required.")
    # Target ~2 MiB x blocks (HBM-bound pipelines only approach roofline at
    # MiB-scale tiles), clamp by VMEM, cap at 4096 rows.
    t = (2 * 1024 * 1024) // (in_feats * 4)
    t = max(8, min(t, budget // per_row, 4096))
    if t >= 256:
        t = _round_down(t, 256)   # 256-row MXU passes on v6e/v7x (also a multiple of 128 for v5e)
    else:
        t = _round_down(t, 8)     # f32 sublane granule
    # Guarantee >= 2 grid steps when possible: lets ("parallel",) split the batch
    # across v7x's two TensorCores and re-enables DMA/compute overlap everywhere.
    if t >= n:
        if n > 8:
            t = _round_up(-(-n // 2), 8)
        else:
            t = _round_up(max(n, 1), 8)
    return t


# ----------------------------------------------------------------------------- kernel
def _mlp_predictor_kernel(x_ref, w1_ref, b1_ref, w2_ref, b2_ref, o_ref, *, use_sigmoid):
    """Fused MLP head for one batch tile: Linear -> ReLU -> (BN-folded) Linear -> act."""
    # bf16 cast happens here (VPU, hidden under the x DMA), not in the wrapper.
    x = x_ref[...].astype(jnp.bfloat16)
    h = jnp.dot(x, w1_ref[...], preferred_element_type=jnp.float32)          # (T, H) f32
    h = jnp.maximum(h + b1_ref[...], 0.0)                                    # bias + ReLU, f32
    # Linear 2 (eval-mode BatchNorm affine already folded into w2/b2).
    logits = jnp.dot(h.astype(w2_ref.dtype), w2_ref[...],
                     preferred_element_type=jnp.float32)                     # (T, O_pad) f32
    logits = logits + b2_ref[...]
    if use_sigmoid:
        # Numerically-stable sigmoid (no inf intermediate); reciprocal -> EUP slot.
        z = jnp.exp(-jnp.abs(logits))
        inv = pl.reciprocal(1.0 + z, approx=True)
        out = jnp.where(logits >= 0, inv, z * inv)
    else:
        # Numerically-stable softmax over the last axis.  Padded columns carry
        # logits of -1e30 (see prepare_params) -> exp == 0 -> sum unchanged.
        m = jnp.max(logits, axis=-1, keepdims=True)
        e = jnp.exp(logits - m)
        out = e * pl.reciprocal(jnp.sum(e, axis=-1, keepdims=True), approx=True)
    o_ref[...] = out.astype(o_ref.dtype)


# ----------------------------------------------------------------------------- wrapper
def prepare_params(params, output):
    """One-time per parameter set: fold eval BatchNorm1d into the second linear,
    cast weights to bf16, and pad the output dim to a lane-dense multiple of 128.
    Hoisted out of the per-forward path so each forward is just the Pallas call."""
    in_feats, hidden = params["w1"].shape
    assert params["w2"].shape == (hidden, output)

    inv_std = 1.0 / jnp.sqrt(params["bn_running_var"].astype(jnp.float32) + params["bn_eps"])
    bn_scale = params["bn_gamma"] * inv_std                                  # (H,)
    bn_shift = params["bn_beta"] - params["bn_running_mean"] * bn_scale      # (H,)
    w2_folded = bn_scale[:, None] * params["w2"]                             # (H, O)
    b2_folded = bn_shift @ params["w2"] + params["b2"]                       # (O,)

    # Lane-dense output: pad O up to a multiple of 128 so matmul-2, the softmax
    # reductions and the output stores run on full vregs instead of masked lanes.
    o_pad = output if output % 128 == 0 else _round_up(output, 128)
    pad_fill = 0.0 if output == 1 else -1e30     # softmax: padded logits -> -1e30 -> exp 0
    w2_p = jnp.zeros((hidden, o_pad), jnp.float32).at[:, :output].set(w2_folded)
    b2_p = jnp.full((o_pad,), pad_fill, jnp.float32).at[:output].set(b2_folded)

    return {
        "w1": params["w1"].astype(jnp.bfloat16),                  # (I, H) bf16, resident
        "b1": params["b1"].reshape(1, hidden).astype(jnp.float32),
        "w2": w2_p.astype(jnp.bfloat16),                          # (H, O_pad) bf16, resident
        "b2": b2_p.reshape(1, o_pad).astype(jnp.float32),
        "in_feats": in_feats, "hidden": hidden,
        "output": output, "o_pad": o_pad,
        "use_sigmoid": output == 1,
    }


def mlp_predictor_forward(feats, prep, *, tile_n=None):
    """Runs the fused, batch-tiled Pallas kernel. `feats` is (N, in_feats)."""
    n, in_feats = feats.shape
    assert in_feats == prep["in_feats"], "feature dim mismatch vs prepared params"
    hidden, o_pad, output = prep["hidden"], prep["o_pad"], prep["output"]

    # Generation-aware scoped-VMEM cap: 128 MiB parts (v5e/v6e) -> 100 MiB,
    # 64 MiB parts (v7x per TC) -> 48 MiB.
    vmem_cap = (100 << 20) if _vmem_physical_bytes() >= (128 << 20) else (48 << 20)

    if tile_n is None:
        tile_n = _choose_tile_n(n, in_feats, hidden, o_pad, vmem_cap)
    else:
        tile_n = max(8, _round_down(tile_n, 8))

    footprint = _vmem_footprint_bytes(tile_n, in_feats, hidden, o_pad)
    assert footprint <= vmem_cap, (
        f"estimated VMEM footprint {footprint} B exceeds scoped cap {vmem_cap} B; "
        "shrink tile_n or add the hidden-blocked fallback")

    grid = (pl.cdiv(n, tile_n),)
    kernel = functools.partial(_mlp_predictor_kernel, use_sigmoid=prep["use_sigmoid"])
    x = feats.astype(jnp.float32)   # streamed as-is; bf16 cast happens inside the kernel

    def build(single_buffer_residents):
        res_kw = {"pipeline_mode": pl.Buffered(1)} if single_buffer_residents else {}
        in_specs = [
            pl.BlockSpec((tile_n, in_feats), lambda i: (i, 0)),              # x: streamed per tile
            pl.BlockSpec((in_feats, hidden), lambda i: (0, 0), **res_kw),    # w1: resident
            pl.BlockSpec((1, hidden),        lambda i: (0, 0), **res_kw),    # b1: resident
            pl.BlockSpec((hidden, o_pad),    lambda i: (0, 0), **res_kw),    # w2 (BN-folded, padded)
            pl.BlockSpec((1, o_pad),         lambda i: (0, 0), **res_kw),    # b2 (BN-folded, padded)
        ]
        return pl.pallas_call(
            kernel,
            out_shape=jax.ShapeDtypeStruct((n, o_pad), jnp.float32),
            grid=grid,
            in_specs=in_specs,
            out_specs=pl.BlockSpec((tile_n, o_pad), lambda i: (i, 0)),
            compiler_params=pltpu.CompilerParams(
                dimension_semantics=("parallel",),   # megacore sharding on v7x; no-op elsewhere
                vmem_limit_bytes=vmem_cap,
            ),
        )

    try:
        out_p = build(True)(x, prep["w1"], prep["b1"], prep["w2"], prep["b2"])
    except Exception:
        # Fallback: default (double-buffered) residents if Buffered(1) is rejected.
        out_p = build(False)(x, prep["w1"], prep["b1"], prep["w2"], prep["b2"])

    return out_p[:, :output] if o_pad != output else out_p


# ----------------------------------------------------------------------------- reference & test
def _reference_forward(feats, params, *, output):
    """Pure-JAX f32 reference for correctness checking."""
    h = feats @ params["w1"] + params["b1"]
    h = jnp.maximum(h, 0.0)
    inv_std = 1.0 / jnp.sqrt(params["bn_running_var"] + params["bn_eps"])
    h = (h - params["bn_running_mean"]) * inv_std * params["bn_gamma"] + params["bn_beta"]
    logits = h @ params["w2"] + params["b2"]
    if output == 1:
        return jax.nn.sigmoid(logits)
    return jax.nn.softmax(logits, axis=-1)


def init_params(key, in_feats, hidden_feats, output):
    """Deterministic synthetic parameters matching the nn.Module shapes."""
    k1, k2, k3, k4, k5, k6, k7, k8 = jax.random.split(key, 8)
    lim1 = 1.0 / jnp.sqrt(jnp.float32(in_feats))
    lim2 = 1.0 / jnp.sqrt(jnp.float32(hidden_feats))
    return {
        "w1": jax.random.uniform(k1, (in_feats, hidden_feats), jnp.float32, -lim1, lim1),
        "b1": jax.random.uniform(k2, (hidden_feats,), jnp.float32, -lim1, lim1),
        "bn_gamma": 1.0 + 0.1 * jax.random.normal(k3, (hidden_feats,), jnp.float32),
        "bn_beta": 0.1 * jax.random.normal(k4, (hidden_feats,), jnp.float32),
        "bn_running_mean": 0.1 * jax.random.normal(k5, (hidden_feats,), jnp.float32),
        "bn_running_var": 1.0 + 0.1 * jax.random.uniform(k6, (hidden_feats,), jnp.float32),
        "bn_eps": jnp.float32(1e-5),
        "w2": jax.random.uniform(k7, (hidden_feats, output), jnp.float32, -lim2, lim2),
        "b2": jax.random.uniform(k8, (output,), jnp.float32, -lim2, lim2),
    }


if __name__ == "__main__":
    key = jax.random.PRNGKey(0)
    k_feats, k_params = jax.random.split(key)

    # Small shapes; N not a multiple of the auto-chosen tile (16) -> grid of 2 + tail padding.
    N, IN_FEATS, HIDDEN, OUTPUT = 24, 32, 64, 4   # OUTPUT > 1 -> softmax branch

    feats = jax.random.normal(k_feats, (N, IN_FEATS), jnp.float32)

    # Softmax branch (output padded 4 -> 128 lane-dense, sliced back after the call).
    params = init_params(k_params, IN_FEATS, HIDDEN, OUTPUT)
    prep = prepare_params(params, OUTPUT)         # one-time: BN fold, bf16 casts, O padding
    out = jax.block_until_ready(mlp_predictor_forward(feats, prep))
    ref = _reference_forward(feats, params, output=OUTPUT)
    assert out.shape == (N, OUTPUT)
    # bf16 MXU streams + approx reciprocal -> relaxed tolerance vs f32 reference.
    assert jnp.allclose(out, ref, atol=2e-2, rtol=2e-2), "mismatch vs reference (softmax)"

    # Sigmoid branch (output == 1).
    params1 = init_params(k_params, IN_FEATS, HIDDEN, 1)
    prep1 = prepare_params(params1, 1)
    out1 = jax.block_until_ready(mlp_predictor_forward(feats, prep1))
    ref1 = _reference_forward(feats, params1, output=1)
    assert out1.shape == (N, 1)
    assert jnp.allclose(out1, ref1, atol=2e-2, rtol=2e-2), "mismatch vs reference (sigmoid)"

    print("KERNEL_OK")
</pallas_src>

<mosaic_0001>
module attributes {stable_mosaic.version = 11 : i64} {
  func.func @_mlp_predictor_kernel(%arg0: i32, %arg1: memref<16x32xf32, #tpu.memory_space<vmem>>, %arg2: memref<32x64xbf16, #tpu.memory_space<vmem>>, %arg3: memref<1x64xf32, #tpu.memory_space<vmem>>, %arg4: memref<64x128xbf16, #tpu.memory_space<vmem>>, %arg5: memref<1x128xf32, #tpu.memory_space<vmem>>, %arg6: memref<16x128xf32, #tpu.memory_space<vmem>>) attributes {dimension_semantics = [#tpu.dimension_semantics<parallel>], iteration_bounds = array<i64: 2>, scalar_prefetch = 0 : i64, scratch_operands = 0 : i64, tpu.core_type = #tpu.core_type<tc>, window_params = [{transform_indices = @transform_0, window_bounds = array<i64: 16, 32>}, {pipeline_mode = #tpu.pipeline_mode<synchronous>, transform_indices = @transform_1, window_bounds = array<i64: 32, 64>}, {pipeline_mode = #tpu.pipeline_mode<synchronous>, transform_indices = @transform_2, window_bounds = array<i64: 1, 64>}, {pipeline_mode = #tpu.pipeline_mode<synchronous>, transform_indices = @transform_3, window_bounds = array<i64: 64, 128>}, {pipeline_mode = #tpu.pipeline_mode<synchronous>, transform_indices = @transform_4, window_bounds = array<i64: 1, 128>}, {transform_indices = @transform_5, window_bounds = array<i64: 16, 128>}]} {
    %c0 = arith.constant 0 : index
    %c0_0 = arith.constant 0 : index
    %0 = vector.load %arg1[%c0, %c0_0] : memref<16x32xf32, #tpu.memory_space<vmem>>, vector<16x32xf32>
    %1 = arith.truncf %0 : vector<16x32xf32> to vector<16x32xbf16>
    %c0_1 = arith.constant 0 : index
    %c0_2 = arith.constant 0 : index
    %2 = vector.load %arg2[%c0_1, %c0_2] : memref<32x64xbf16, #tpu.memory_space<vmem>>, vector<32x64xbf16>
    %cst = arith.constant dense<0.000000e+00> : vector<16x64xf32>
    %3 = tpu.matmul %1, %2, %cst {dimension_numbers = #tpu.dot_dimension_numbers<[1], [0], [0], [1], [0, 0, 1, 1], [], []>} : vector<16x32xbf16>, vector<32x64xbf16>, vector<16x64xf32> -> vector<16x64xf32>
    %c0_3 = arith.constant 0 : index
    %c0_4 = arith.constant 0 : index
    %4 = vector.load %arg3[%c0_3, %c0_4] : memref<1x64xf32, #tpu.memory_space<vmem>>, vector<1x64xf32>
    %5 = vector.broadcast %4 : vector<1x64xf32> to vector<16x64xf32>
    %6 = arith.addf %3, %5 : vector<16x64xf32>
    %cst_5 = arith.constant 0.000000e+00 : f32
    %7 = vector.broadcast %cst_5 : f32 to vector<16x64xf32>
    %8 = arith.maximumf %6, %7 : vector<16x64xf32>
    %9 = arith.truncf %8 : vector<16x64xf32> to vector<16x64xbf16>
    %c0_6 = arith.constant 0 : index
    %c0_7 = arith.constant 0 : index
    %10 = vector.load %arg4[%c0_6, %c0_7] : memref<64x128xbf16, #tpu.memory_space<vmem>>, vector<64x128xbf16>
    %cst_8 = arith.constant dense<0.000000e+00> : vector<16x128xf32>
    %11 = tpu.matmul %9, %10, %cst_8 {dimension_numbers = #tpu.dot_dimension_numbers<[1], [0], [0], [1], [0, 0, 1, 1], [], []>} : vector<16x64xbf16>, vector<64x128xbf16>, vector<16x128xf32> -> vector<16x128xf32>
    %c0_9 = arith.constant 0 : index
    %c0_10 = arith.constant 0 : index
    %12 = vector.load %arg5[%c0_9, %c0_10] : memref<1x128xf32, #tpu.memory_space<vmem>>, vector<1x128xf32>
    %13 = vector.broadcast %12 : vector<1x128xf32> to vector<16x128xf32>
    %14 = arith.addf %11, %13 : vector<16x128xf32>
    %cst_11 = arith.constant dense<0xFF800000> : vector<16xf32>
    %15 = vector.multi_reduction <maximumf>, %14, %cst_11 [1] : vector<16x128xf32> to vector<16xf32>
    %16 = vector.shape_cast %15 : vector<16xf32> to vector<16x1xf32>
    %17 = vector.broadcast %16 : vector<16x1xf32> to vector<16x128xf32>
    %18 = arith.subf %14, %17 : vector<16x128xf32>
    %19 = math.exp %18 : vector<16x128xf32>
    %cst_12 = arith.constant dense<0.000000e+00> : vector<16xf32>
    %20 = vector.multi_reduction <add>, %19, %cst_12 [1] : vector<16x128xf32> to vector<16xf32>
    %21 = vector.shape_cast %20 : vector<16xf32> to vector<16x1xf32>
    %22 = tpu.reciprocal %21 {approx = true} : vector<16x1xf32> -> vector<16x1xf32>
    %23 = vector.broadcast %22 : vector<16x1xf32> to vector<16x128xf32>
    %24 = arith.mulf %19, %23 : vector<16x128xf32>
    %c0_13 = arith.constant 0 : index
    %c0_14 = arith.constant 0 : index
    %25 = vector.load %arg6[%c0_13, %c0_14] : memref<16x128xf32, #tpu.memory_space<vmem>>, vector<16x128xf32>
    tpu.vector_store %arg6[%c0_13, %c0_14], %24 {strides = array<i32>} : memref<16x128xf32, #tpu.memory_space<vmem>>, vector<16x128xf32>,
    return
  }
  func.func @transform_0(%arg0: i32) -> (i32, i32) {
    %c0_i32 = arith.constant 0 : i32
    %c0_i32_0 = arith.constant 0 : i32
    return %arg0, %c0_i32 : i32, i32
  }
  func.func @transform_1(%arg0: i32) -> (i32, i32) {
    %c0_i32 = arith.constant 0 : i32
    %c0_i32_0 = arith.constant 0 : i32
    %c0_i32_1 = arith.constant 0 : i32
    return %c0_i32, %c0_i32_0 : i32, i32
  }
  func.func @transform_2(%arg0: i32) -> (i32, i32) {
    %c0_i32 = arith.constant 0 : i32
    %c0_i32_0 = arith.constant 0 : i32
    %c0_i32_1 = arith.constant 0 : i32
    return %c0_i32, %c0_i32_0 : i32, i32
  }
  func.func @transform_3(%arg0: i32) -> (i32, i32) {
    %c0_i32 = arith.constant 0 : i32
    %c0_i32_0 = arith.constant 0 : i32
    %c0_i32_1 = arith.constant 0 : i32
    return %c0_i32, %c0_i32_0 : i32, i32
  }
  func.func @transform_4(%arg0: i32) -> (i32, i32) {
    %c0_i32 = arith.constant 0 : i32
    %c0_i32_0 = arith.constant 0 : i32
    %c0_i32_1 = arith.constant 0 : i32
    return %c0_i32, %c0_i32_0 : i32, i32
  }
  func.func @transform_5(%arg0: i32) -> (i32, i32) {
    %c0_i32 = arith.constant 0 : i32
    %c0_i32_0 = arith.constant 0 : i32
    return %arg0, %c0_i32 : i32, i32
  }
}

module attributes {stable_mosaic.version = 11 : i64} {
  func.func @_mlp_predictor_kernel(%arg0: i32, %arg1: memref<16x32xf32, #tpu.memory_space<vmem>>, %arg2: memref<32x64xbf16, #tpu.memory_space<vmem>>, %arg3: memref<1x64xf32, #tpu.memory_space<vmem>>, %arg4: memref<64x128xbf16, #tpu.memory_space<vmem>>, %arg5: memref<1x128xf32, #tpu.memory_space<vmem>>, %arg6: memref<16x128xf32, #tpu.memory_space<vmem>>) attributes {dimension_semantics = [#tpu.dimension_semantics<parallel>], iteration_bounds = array<i64: 2>, scalar_prefetch = 0 : i64, scratch_operands = 0 : i64, tpu.core_type = #tpu.core_type<tc>, window_params = [{transform_indices = @transform_0, window_bounds = array<i64: 16, 32>}, {pipeline_mode = #tpu.pipeline_mode<synchronous>, transform_indices = @transform_1, window_bounds = array<i64: 32, 64>}, {pipeline_mode = #tpu.pipeline_mode<synchronous>, transform_indices = @transform_2, window_bounds = array<i64: 1, 64>}, {pipeline_mode = #tpu.pipeline_mode<synchronous>, transform_indices = @transform_3, window_bounds = array<i64: 64, 128>}, {pipeline_mode = #tpu.pipeline_mode<synchronous>, transform_indices = @transform_4, window_bounds = array<i64: 1, 128>}, {transform_indices = @transform_5, window_bounds = array<i64: 16, 128>}]} {
    %c0 = arith.constant 0 : index
    %c0_0 = arith.constant 0 : index
    %0 = vector.load %arg1[%c0, %c0_0] : memref<16x32xf32, #tpu.memory_space<vmem>>, vector<16x32xf32>
    %1 = arith.truncf %0 : vector<16x32xf32> to vector<16x32xbf16>
    %c0_1 = arith.constant 0 : index
    %c0_2 = arith.constant 0 : index
    %2 = vector.load %arg2[%c0_1, %c0_2] : memref<32x64xbf16, #tpu.memory_space<vmem>>, vector<32x64xbf16>
    %cst = arith.constant dense<0.000000e+00> : vector<16x64xf32>
    %3 = tpu.matmul %1, %2, %cst {dimension_numbers = #tpu.dot_dimension_numbers<[1], [0], [0], [1], [0, 0, 1, 1], [], []>} : vector<16x32xbf16>, vector<32x64xbf16>, vector<16x64xf32> -> vector<16x64xf32>
    %c0_3 = arith.constant 0 : index
    %c0_4 = arith.constant 0 : index
    %4 = vector.load %arg3[%c0_3, %c0_4] : memref<1x64xf32, #tpu.memory_space<vmem>>, vector<1x64xf32>
    %5 = vector.broadcast %4 : vector<1x64xf32> to vector<16x64xf32>
    %6 = arith.addf %3, %5 : vector<16x64xf32>
    %cst_5 = arith.constant 0.000000e+00 : f32
    %7 = vector.broadcast %cst_5 : f32 to vector<16x64xf32>
    %8 = arith.maximumf %6, %7 : vector<16x64xf32>
    %9 = arith.truncf %8 : vector<16x64xf32> to vector<16x64xbf16>
    %c0_6 = arith.constant 0 : index
    %c0_7 = arith.constant 0 : index
    %10 = vector.load %arg4[%c0_6, %c0_7] : memref<64x128xbf16, #tpu.memory_space<vmem>>, vector<64x128xbf16>
    %cst_8 = arith.constant dense<0.000000e+00> : vector<16x128xf32>
    %11 = tpu.matmul %9, %10, %cst_8 {dimension_numbers = #tpu.dot_dimension_numbers<[1], [0], [0], [1], [0, 0, 1, 1], [], []>} : vector<16x64xbf16>, vector<64x128xbf16>, vector<16x128xf32> -> vector<16x128xf32>
    %c0_9 = arith.constant 0 : index
    %c0_10 = arith.constant 0 : index
    %12 = vector.load %arg5[%c0_9, %c0_10] : memref<1x128xf32, #tpu.memory_space<vmem>>, vector<1x128xf32>
    %13 = vector.broadcast %12 : vector<1x128xf32> to vector<16x128xf32>
    %14 = arith.addf %11, %13 : vector<16x128xf32>
    %cst_11 = arith.constant dense<0xFF800000> : vector<16xf32>
    %15 = vector.multi_reduction <maximumf>, %14, %cst_11 [1] : vector<16x128xf32> to vector<16xf32>
    %16 = vector.shape_cast %15 : vector<16xf32> to vector<16x1xf32>
    %17 = vector.broadcast %16 : vector<16x1xf32> to vector<16x128xf32>
    %18 = arith.subf %14, %17 : vector<16x128xf32>
    %19 = math.exp %18 : vector<16x128xf32>
    %cst_12 = arith.constant dense<0.000000e+00> : vector<16xf32>
    %20 = vector.multi_reduction <add>, %19, %cst_12 [1] : vector<16x128xf32> to vector<16xf32>
    %21 = vector.shape_cast %20 : vector<16xf32> to vector<16x1xf32>
    %22 = tpu.reciprocal %21 {approx = true} : vector<16x1xf32> -> vector<16x1xf32>
    %23 = vector.broadcast %22 : vector<16x1xf32> to vector<16x128xf32>
    %24 = arith.mulf %19, %23 : vector<16x128xf32>
    %c0_13 = arith.constant 0 : index
    %c0_14 = arith.constant 0 : index
    %25 = vector.load %arg6[%c0_13, %c0_14] : memref<16x128xf32, #tpu.memory_space<vmem>>, vector<16x128xf32>
    tpu.vector_store %arg6[%c0_13, %c0_14], %24 {strides = array<i32>} : memref<16x128xf32, #tpu.memory_space<vmem>>, vector<16x128xf32>,
    return
  }
  func.func @transform_0(%arg0: i32) -> (i32, i32) {
    %c0_i32 = arith.constant 0 : i32
    %c0_i32_0 = arith.constant 0 : i32
    return %arg0, %c0_i32 : i32, i32
  }
  func.func @transform_1(%arg0: i32) -> (i32, i32) {
    %c0_i32 = arith.constant 0 : i32
    %c0_i32_0 = arith.constant 0 : i32
    %c0_i32_1 = arith.constant 0 : i32
    return %c0_i32, %c0_i32_0 : i32, i32
  }
  func.func @transform_2(%arg0: i32) -> (i32, i32) {
    %c0_i32 = arith.constant 0 : i32
    %c0_i32_0 = arith.constant 0 : i32
    %c0_i32_1 = arith.constant 0 : i32
    return %c0_i32, %c0_i32_0 : i32, i32
  }
  func.func @transform_3(%arg0: i32) -> (i32, i32) {
    %c0_i32 = arith.constant 0 : i32
    %c0_i32_0 = arith.constant 0 : i32
    %c0_i32_1 = arith.constant 0 : i32
    return %c0_i32, %c0_i32_0 : i32, i32
  }
  func.func @transform_4(%arg0: i32) -> (i32, i32) {
    %c0_i32 = arith.constant 0 : i32
    %c0_i32_0 = arith.constant 0 : i32
    %c0_i32_1 = arith.constant 0 : i32
    return %c0_i32, %c0_i32_0 : i32, i32
  }
  func.func @transform_5(%arg0: i32) -> (i32, i32) {
    %c0_i32 = arith.constant 0 : i32
    %c0_i32_0 = arith.constant 0 : i32
    return %arg0, %c0_i32 : i32, i32
  }
}

</mosaic_0001>

<bundles_post_ra>
// kernel: tpu_custom_call.1
= control target key start
LH: loop header
LB: loop body
LE: loop exit
PB: predicated region body
PF: predicated region fallthrough
CT: control target
= control target key end

     0   :  { %s1098_s0 = inlined_call_operand.hbm [shape: f32[24,32], index: 0, kind: input, shape index: {}]   ;;  %s1099_s1 = inlined_call_operand.hbm [shape: bf16[32,64], index: 1, kind: input, shape index: {}]   ;;  %s1100_s2 = inlined_call_operand.vmem [shape: f32[1,64], index: 2, kind: input, shape index: {}]   ;;  %s1101_s3 = inlined_call_operand.hbm [shape: bf16[64,128], index: 3, kind: input, shape index: {}]   ;;  %s1102_s4 = inlined_call_operand.vmem [shape: f32[1,128], index: 4, kind: input, shape index: {}]   ;;  %s1103_s5 = inlined_call_operand.hbm [shape: f32[24,128], index: 5, kind: output, shape index: {}]  }
   0x1   :  { %1107 = sst [smem:[#allocation12_spill]] %s1099_s1 }
   0x2   :  { %10 = vsyncpa [#allocation3], 0 }
   0x3   :  { %12 = vsyncpa [#allocation3 + $0x1], 0 }
   0x4   :  { %13 = vsyncpa [#allocation6], 0 }
   0x5   :  { %14 = vsyncpa [#allocation4], 0 }
   0x6   :  { %16 = vsyncpa [#allocation4 + $0x1], 0  ;;  %s887_s18 = smov 0   ;;  %s889_s19 = smov 0  }
   0x7   :  { %s891_s20 = smov 0   ;;  %s893_s21 = smov 0  }
   0x8 LB: > { %s908_s22 = sadd.s32 4294967295, %s845_s21   ;;  %s529_s23 = sadd.s32 4294967294, %s845_s21   ;;  %s845_s21 = sphi %s893_s21, %s1124_s21   ;;  %s841_s20 = sphi %s891_s20, %s1123_s20   ;;  %s837_s19 = sphi %s889_s19, %s1122_s19   ;;  %s833_s18 = sphi %s887_s18, %s1121_s18  }
   0x9   : > { %s912_s24 = sadd.s32 1, %s845_s21   ;;  %s29_s25 = sadd.s32 1, %s841_s20 }
   0xa   : > { %s26_s26 = ssub.s32 %s845_s21, %s912_s24  ;;  %p36_p0 = scmp.ne.s32.totalorder %s841_s20, %s837_s19 }
   0xb   : > { %p27_p1 = scmp.eq.s32.totalorder %s26_s26, 0  ;;  %p37_p2 = scmp.eq.s32.totalorder %s845_s21, 0 }
   0xc   : > { %p42_p3 = scmp.ne.s32.totalorder %s837_s19, %s833_s18  ;;  %p1106_p4 = scmp.eq.s32.totalorder %s908_s22, 0 }
   0xd   : > { %s924_s27 = scalar_select %p27_p1, %s841_s20, %s29_s25  }
   0xe   : > { %p926_p5 = por %p37_p2, %p36_p0  ;;  %p932_p6 = por %p1106_p4, %p42_p3 }
   0xf   : > { %p150_p7 = scmp.eq.s32.totalorder %s908_s22, 1  ;;  %p156_p8 = scmp.eq.s32.totalorder %s529_s23, 1 }
  0x10   : > { %p530_p9 = scmp.ge.s32.totalorder %s845_s21, 1  ;;  %p163_p10 = scmp.lt.s32.totalorder %s845_s21, 3 }
  0x11   : > { %p939_p11 = por %p150_p7, %p36_p0  ;;  %p943_p12 = por %p156_p8, %p42_p3 }
  0x12   : > { %p947_p13 = pnand %p530_p9, %p163_p10  ;;  %s1113_s1 = sld [smem:[#allocation12_spill]] }
  0x13   : > { %s1111_s6 = scalar_select %p943_p12, 1, 0 }
  0x14   : > { %p599_p1 = pneg %p947_p13  ;;  %s847_s11 = smov [#allocation5]  }
  0x15   : > { %s176_s12 = sshll.u32 %s847_s11, 4  ;;  %s191_s15 = sshll.u32 %s1101_s3, 4  ;;  %s177_s12 = int_to_ptr.vmem [resolvable:$true] %s176_s12  ;;  %s192_s15 = int_to_ptr.hbm [resolvable:$true] %s191_s15 }
  0x16   : > { %p600_p0 = pnand %p599_p1, %p1106_p4  ;;  %s848_s16 = smov 64  }
  0x17   : > { %s849_s17 = smov 4   ;;  %s850_s23 = smov [#allocation7]  }
  0x18   : > { %s174_s10 = sshll.u32 %s1113_s1, 4  ;;  %s193_s25 = sshll.u32 %s850_s23, 4  ;;  %s175_s10 = int_to_ptr.hbm [resolvable:$true] %s174_s10  ;;  %s194_s25 = int_to_ptr.vmem [resolvable:$true] %s193_s25 }
  0x19   : > { %602 = dma.hbm_to_vmem [thread:$0]  (!%p600_p0), %s175_s10, 256, %s177_s12, [#allocation6], %s848_s16, %s848_s16, %s849_s17  }
  0x1a   : > { %605 = dma.hbm_to_vmem [thread:$0]  (!%p600_p0), %s192_s15, 512, %s194_s25, [#allocation6], %s848_s16, %s848_s16, %s849_s17  }
  0x1b   : > { %p1105_p2 = scmp.ge.s32.totalorder %s845_s21, 2 }
  0x1d   : > { %206 = sbr.rel (%p1105_p2) target bundleno = 71 (0x47), region = 32 }
  0x22   : > { %209 = sbr.rel (!%p926_p5) target bundleno = 71 (0x47), region = 36  ;;  %s210_s26 = sand.u32 (%p926_p5), 1, %s841_s20  }
  0x23   : > { %s535_s8 = sshll.u32 (%p926_p5), %s845_s21, 1  ;;  %s534_s9 = sshll.u32 (%p926_p5), %s210_s26, 4 }
  0x24   : > { %s216_s11 = ssub.s32 (%p926_p5), 3, %s535_s8  ;;  %s971_s14 = scalar_lea.sflag (%p926_p5), [#allocation3], %s210_s26 }
  0x25   : > { %p217_p3 = scmp.lt.s32.totalorder (%p926_p5), %s216_s11, 2  ;;  %s214_s15 = scalar_lea.vmem (%p926_p5), [#allocation2], %s534_s9 }
  0x27   : > { %s1126_s11 = smov (!%p217_p3, %s216_s11), 2 }
  0x28   : > { %s536_s10 = sshll.u32 %s1126_s11, 3 }
  0x29   : > { %s220_s12 = ssub.s32 16, %s536_s10 }
  0x2a   : > { %s221_s13 = sshll.u32 %s220_s12, 4 }
  0x2b   : > { %222 = vsyncadd %s971_s14, %s221_s13  ;;  %p974_p5 = scmp.ne.s32.totalorder %s536_s10, 0  ;;  %s581_s16 = sshll.u32 %s845_s21, 4 }
  0x2c   : > { %s225_s25 = scalar_lea.hbm %s1098_s0, %s581_s16  ;;  %s982_s8 = sshll.u32 %s214_s15, 4  ;;  %s230_s8 = int_to_ptr.vmem [resolvable:$true] %s982_s8 }
  0x2d   : > { %s227_s26 = sshll.u32 %s225_s25, 4  ;;  %s1104_s9 = sshll.u32 %s1126_s11, 7  ;;  %s985_s26 = int_to_ptr.hbm [resolvable:$true] %s227_s26 }
  0x2e   : > { %s725_s12 = sshra.s32 %s985_s26, 4  ;;  %s727_s10 = sshrl.u32 %s1104_s9, 4  ;;  %s726_s12 = int_to_ptr.hbm [resolvable:$true] %s725_s12 }
  0x2f   : > { %s732_s13 = scalar_lea.hbm %s726_s12, %s727_s10  ;;  %s736_s15 = scalar_lea.hbm %s1098_s0, 24 }
  0x30   : > { %p733_p7 = scmp.ne.s32.totalorder %s726_s12, %s732_s13  ;;  %p737_p10 = scmp.lt.s32.totalorder %s726_s12, %s1098_s0 }
  0x31   : > { %p738_p1 = scmp.lt.s32.totalorder %s736_s15, %s732_s13 }
  0x32   : > { %p734_p8 = pnand %p733_p7, %p974_p5 }
  0x33   : > { %p739_p0 = por %p738_p1, %p737_p10 }
  0x34   : > { %p735_p9 = pneg %p734_p8 }
  0x36   : > { %p740_p3 = pnand %p739_p0, %p735_p9 }
  0x38   : > { %743 = shalt.err (!%p740_p3)
}
  0x39   : > { %s744_s9 = sshra.s32 %s230_s8, 4  ;;  %s851_s17 = smov [#allocation2]   ;;  %s745_s9 = int_to_ptr.vmem [resolvable:$true] %s744_s9 }
  0x3a   : > { %s751_s1 = scalar_lea.vmem %s745_s9, %s727_s10  ;;  %s755_s16 = scalar_lea.vmem %s851_s17, 32 }
  0x3b   : > { %p752_p7 = scmp.ne.s32.totalorder %s745_s9, %s751_s1  ;;  %p757_p4 = scmp.lt.s32.totalorder %s755_s16, %s751_s1 }
  0x3d   : > { %p753_p8 = pnand %p752_p7, %p974_p5 }
  0x3f   : > { %p754_p2 = pneg %p753_p8 }
  0x41   : > { %p759_p12 = pnand %p757_p4, %p754_p2 }
  0x43   : > { %762 = shalt.err (!%p759_p12)
}
  0x44   : > { %s852_s12 = smov 128   ;;  %s853_s13 = smov 8  }
  0x45   : > { %s1115_s15 = sshll.u32 %s1126_s11, 7 }
  0x46   : > { %235 = dma.hbm_to_vmem [thread:$0]  (%p974_p5), %s985_s26, %s1115_s15, %s230_s8, %s971_s14, %s852_s12, %s852_s12, %s853_s13  }
  0x47 PF: > { %241 = sbr.rel (%p947_p13) target bundleno = 648 (0x288), region = 40  ;;  %s1014_s1 = sand.u32 (!%p947_p13), 1, %s837_s19  }
  0x48   : > { %s542_s9 = sshll.u32 (!%p947_p13), %s1014_s1, 4  ;;  %s244_s10 = scalar_lea.sflag (!%p947_p13), [#allocation3], %s1014_s1 }
  0x49   : > { %s247_s23 = scalar_lea.vmem (!%p947_p13), [#allocation2], %s542_s9 }
  0x4c   : > { %820 = dma.done.wait (%p932_p6), %s244_s10, 256  }
  0x4d   : > { %822 = vsyncadd (%p932_p6), %s244_s10, 4294967040  ;;  %p1116_p4 = scmp.eq.s32.totalorder %s908_s22, 0 }
  0x4f   : > { %824 = dma.done.wait (%p1116_p4), [#allocation6], 768   ;;  %p1117_p12 = pmov %p1116_p4 }
  0x50   : > { %v583_v0 = vld [vmem:[#allocation5 + $0x8] sm:$0xff]  ;;  %v582_v1 = vld [vmem:[#allocation5] sm:$0xff]  ;;  %vm319_vm0 = vcmask 261120   ;;  %v585_v7 = vld [vmem:[#allocation7 + $0x8] sm:$0xff]  ;;  %vm376_vm1 = vcmask 523264   ;;  %s284_s28 = scalar_lea.vmem [#allocation8], %s542_s9 }
  0x51   : > { %826 = vsyncadd (%p1117_p12), [#allocation6], 4294966528  ;;  %329 = vmatpush.bf16.msra.mxu0 %v583_v0  ;;  %v296_v2 = vld [vmem:[%s247_s23] sm:$0xff]  ;;  %v297_v3 = vld [vmem:[%s247_s23 + $0x8] sm:$0xff]  ;;  %s415_s8 = scalar_lea.sflag [#allocation4], %s1014_s1  ;;  %s573_s26 = sshll.u32 (%p939_p11), %s908_s22, 1 }
  0x52   : > { %v298_v4 = vpack.c.bf16 %v297_v3, %v296_v2  ;;  %v587_v5 = vld [vmem:[#allocation7 + $0x18] sm:$0xff]  ;;  %v586_v6 = vld [vmem:[#allocation7 + $0x10] sm:$0xff]  ;;  %v584_v8 = vld [vmem:[#allocation7] sm:$0xff]  ;;  %s423_s25 = ssub.s32 (%p939_p11), 3, %s573_s26 }
  0x53   : > { %384 = vmatpush.bf16.msra.mxu1 %v587_v5  ;;  %v655_v10 = vld [vmem:[%s1100_s2] ss:$0 sm:$0xff]  ;;  %p424_p6 = scmp.lt.s32.totalorder (%p939_p11), %s423_s25, 2 }
  0x54   : > { %v656_v17 = vld [vmem:[%s1102_s4] ss:$0 sm:$0xff] }
  0x55   : > { %330 = vmatpush.bf16.msra.mxu0 %v582_v1 }
  0x57   : > { %385 = vmatpush.bf16.msra.mxu1 %v586_v6 }
  0x58   : > { %554 = vmatmul.msk.bf16.vlgmr.msra.gmra.mxu0 %vm319_vm0, %v298_v4 }
  0x5b   : > { %386 = vmatpush.bf16.msra.mxu1 %v585_v7 }
  0x5f   : > { %387 = vmatpush.bf16.msra.mxu1 %v584_v8 }
  0xd5   : > { %v332_v9 = vpop.f32.mrf.mxu0 }
  0xd6   : > { %v333_v11 = vadd.f32 %v655_v10, %v332_v9 }
  0xd8   : > { %v337_v14 = vmax.f32 %v333_v11, 0.0 }
  0xdd   : > { %v334_v12 = vpop.f32.mrf.mxu0 }
  0xde   : > { %v335_v13 = vadd.f32 %v655_v10, %v334_v12 }
  0xe0   : > { %v338_v15 = vmax.f32 %v335_v13, 0.0 }
  0xe2   : > { %v339_v16 = vpack.c.bf16 %v338_v15, %v337_v14 }
  0xe4   : > { %571 = vmatmul.msk.bf16.vlgmr.msra.gmra.mxu1 %vm376_vm1, %v339_v16 }
 0x161   : > { %v389_v18 = vpop.f32.mrf.mxu1 }
 0x162   : > { %v390_v19 = vadd.f32 %v656_v17, %v389_v18 }
 0x164   : > { %394 = vmax.xlane.f32.xlu0 %v390_v19 }
 0x169   : > { %v391_v20 = vpop.f32.mrf.mxu1 }
 0x16a   : > { %v392_v21 = vadd.f32 %v656_v17, %v391_v20 }
 0x16c   : > { %396 = vmax.xlane.f32.xlu0 %v392_v21 }
 0x1d7   : > { %v395_v22 = vpop.xlane.xlu0 %394 }
 0x1d8   : > { %v398_v23 = vsub.f32 %v390_v19, %v395_v22 }
 0x1da   : > { %v400_v24 = vmul.f32 1.442695, %v398_v23 }
 0x1dc   : > { %657 = vpow2.f32 %v400_v24 }
 0x1df   : > { %v397_v25 = vpop.xlane.xlu0 %396 }
 0x1e0   : > { %v399_v26 = vsub.f32 %v392_v21, %v397_v25 }
 0x1e2   : > { %v658_v27 = vpop.eup %657  ;;  %v402_v28 = vmul.f32 1.442695, %v399_v26 }
 0x1e3   : > { %404 = vadd.xlane.f32.xlu1 %v658_v27 }
 0x1e4   : > { %659 = vpow2.f32 %v402_v28 }
 0x1ea   : > { %v660_v29 = vpop.eup %659 }
 0x1eb   : > { %406 = vadd.xlane.f32.xlu1 %v660_v29 }
 0x256   : > { %v405_v30 = vpop.xlane.xlu1 %404 }
 0x257   : > { %661 = vrcp.f32 %v405_v30 }
 0x25d   : > { %v662_v31 = vpop.eup %661 }
 0x25e   : > { %v410_v32 = vmul.f32 %v662_v31, %v658_v27  ;;  %v407_v33 = vpop.xlane.xlu1 %406 }
 0x25f   : > { %663 = vrcp.f32 %v407_v33 }
 0x260   : > { %412 = vst [vmem:[%s284_s28] sm:$0xff] %v410_v32 }
 0x264   : > { %421 = sbr.rel (!%p939_p11) target bundleno = 648 (0x288), region = 56 }
 0x265   : > { %v664_v34 = vpop.eup %663 }
 0x266   : > { %v411_v35 = vmul.f32 %v664_v34, %v660_v29 }
 0x268   : > { %413 = vst [vmem:[%s284_s28 + $0x8] sm:$0xff] %v411_v35 }
 0x269   : > { %s1128_s25 = smov (!%p424_p6, %s423_s25), 2 }
 0x26a   : > { %s574_s17 = sshll.u32 %s1128_s25, 3 }
 0x26b   : > { %s427_s16 = ssub.s32 16, %s574_s17 }
 0x26c   : > { %s428_s12 = sshll.u32 %s427_s16, 4 }
 0x26d   : > { %429 = vsyncadd %s415_s8, %s428_s12  ;;  %p1045_p13 = scmp.ne.s32.totalorder %s574_s17, 0  ;;  %s588_s30 = sshll.u32 %s908_s22, 4 }
 0x26e   : > { %s432_s10 = scalar_lea.hbm %s1103_s5, %s588_s30  ;;  %s434_s23 = sshll.u32 %s284_s28, 4  ;;  %s1053_s23 = int_to_ptr.vmem [resolvable:$true] %s434_s23 }
 0x26f   : > { %s436_s29 = sshll.u32 %s432_s10, 4  ;;  %s578_s7 = sshll.u32 %s1128_s25, 7  ;;  %s1055_s29 = int_to_ptr.hbm [resolvable:$true] %s436_s29 }
 0x270   : > { %s764_s11 = sshra.s32 %s1053_s23, 4  ;;  %s766_s14 = sshrl.u32 %s578_s7, 4  ;;  %s765_s11 = int_to_ptr.vmem [resolvable:$true] %s764_s11 }
 0x271   : > { %s771_s26 = scalar_lea.vmem %s765_s11, %s766_s14  ;;  %s854_s22 = smov [#allocation8]  }
 0x272   : > { %p772_p11 = scmp.ne.s32.totalorder %s765_s11, %s771_s26  ;;  %s775_s17 = scalar_lea.vmem %s854_s22, 32 }
 0x273   : > { %p777_p9 = scmp.lt.s32.totalorder %s775_s17, %s771_s26 }
 0x274   : > { %p773_p2 = pnand %p772_p11, %p1045_p13 }
 0x276   : > { %p774_p5 = pneg %p773_p2 }
 0x278   : > { %p779_p10 = pnand %p777_p9, %p774_p5 }
 0x27a   : > { %782 = shalt.err (!%p779_p10)
}
 0x27b   : > { %s783_s28 = sshra.s32 %s1055_s29, 4  ;;  %s794_s15 = scalar_lea.hbm %s1103_s5, 24  ;;  %s784_s28 = int_to_ptr.hbm [resolvable:$true] %s783_s28 }
 0x27c   : > { %s790_s16 = scalar_lea.hbm %s784_s28, %s766_s14  ;;  %p795_p7 = scmp.lt.s32.totalorder %s784_s28, %s1103_s5 }
 0x27d   : > { %p791_p1 = scmp.ne.s32.totalorder %s784_s28, %s790_s16  ;;  %p796_p8 = scmp.lt.s32.totalorder %s794_s15, %s790_s16 }
 0x27f   : > { %p792_p0 = pnand %p791_p1, %p1045_p13  ;;  %p797_p4 = por %p796_p8, %p795_p7 }
 0x281   : > { %p793_p3 = pneg %p792_p0 }
 0x283   : > { %p798_p12 = pnand %p797_p4, %p793_p3 }
 0x285   : > { %801 = shalt.err (!%p798_p12)
}
 0x286   : > { %s855_s11 = smov 128   ;;  %s856_s14 = smov 8  }
 0x287   : > { %442 = dma.vmem_to_hbm [thread:$0]  (%p1045_p13), %s1053_s23, %s578_s7, %s1055_s29, %s415_s8, %s855_s11, %s855_s11, %s856_s14  }
 0x288 PF: > { %s451_s26 = sand.u32 1, %s833_s18   ;;  %p1119_p6 = scmp.ne.s32.totalorder %s1111_s6, 0 }
 0x289   : > { %p1120_p11 = scmp.ge.s32.totalorder %s845_s21, 2  ;;  %s452_s22 = scalar_lea.sflag [#allocation4], %s451_s26 }
 0x28b   : > { %p607_p2 = pnand %p1120_p11, %p1119_p6 }
 0x28d   : > { %p608_p5 = pneg %p607_p2 }
 0x28f   : > { %828 = dma.done.wait (%p608_p5), %s452_s22, 256  }
 0x290   : > { %830 = vsyncadd (%p608_p5), %s452_s22, 4294967040  ;;  %p19_p9 = scmp.ge.s32.totalorder %s912_s24, 4   ;;  %s1121_s18 = smov %s837_s19 }
 0x291   : > { %s1122_s19 = smov %s841_s20  ;;  %s1123_s20 = smov %s924_s27 }
 0x292   : > { %s1124_s21 = smov %s912_s24  ;;  %21 = sbr.rel (!%p19_p9) target bundleno = 8 (0x8), region = 93 }
 0x297   :  { %458 = vsyncpa [#allocation3], 1 }
 0x298   :  { %460 = vsyncpa [#allocation3 + $0x1], 1 }
 0x299   :  { %461 = vsyncpa [#allocation6], 1 }
 0x29a   :  { %462 = vsyncpa [#allocation4], 1 }
 0x29b   :  { %464 = vsyncpa [#allocation4 + $0x1], 1 }

// kernel: tpu_custom_call.1
= control target key start
LH: loop header
LB: loop body
LE: loop exit
PB: predicated region body
PF: predicated region fallthrough
CT: control target
= control target key end

     0   :  { %s1098_s0 = inlined_call_operand.hbm [shape: f32[24,32], index: 0, kind: input, shape index: {}]   ;;  %s1099_s1 = inlined_call_operand.hbm [shape: bf16[32,64], index: 1, kind: input, shape index: {}]   ;;  %s1100_s2 = inlined_call_operand.vmem [shape: f32[1,64], index: 2, kind: input, shape index: {}]   ;;  %s1101_s3 = inlined_call_operand.hbm [shape: bf16[64,128], index: 3, kind: input, shape index: {}]   ;;  %s1102_s4 = inlined_call_operand.vmem [shape: f32[1,128], index: 4, kind: input, shape index: {}]   ;;  %s1103_s5 = inlined_call_operand.hbm [shape: f32[24,128], index: 5, kind: output, shape index: {}]  }
   0x1   :  { %1107 = sst [smem:[#allocation12_spill]] %s1099_s1 }
   0x2   :  { %10 = vsyncpa [#allocation3], 0 }
   0x3   :  { %12 = vsyncpa [#allocation3 + $0x1], 0 }
   0x4   :  { %13 = vsyncpa [#allocation6], 0 }
   0x5   :  { %14 = vsyncpa [#allocation4], 0 }
   0x6   :  { %16 = vsyncpa [#allocation4 + $0x1], 0  ;;  %s887_s18 = smov 0   ;;  %s889_s19 = smov 0  }
   0x7   :  { %s891_s20 = smov 0   ;;  %s893_s21 = smov 0  }
   0x8 LB: > { %s908_s22 = sadd.s32 4294967295, %s845_s21   ;;  %s529_s23 = sadd.s32 4294967294, %s845_s21   ;;  %s845_s21 = sphi %s893_s21, %s1124_s21   ;;  %s841_s20 = sphi %s891_s20, %s1123_s20   ;;  %s837_s19 = sphi %s889_s19, %s1122_s19   ;;  %s833_s18 = sphi %s887_s18, %s1121_s18  }
   0x9   : > { %s912_s24 = sadd.s32 1, %s845_s21   ;;  %s29_s25 = sadd.s32 1, %s841_s20 }
   0xa   : > { %s26_s26 = ssub.s32 %s845_s21, %s912_s24  ;;  %p36_p0 = scmp.ne.s32.totalorder %s841_s20, %s837_s19 }
   0xb   : > { %p27_p1 = scmp.eq.s32.totalorder %s26_s26, 0  ;;  %p37_p2 = scmp.eq.s32.totalorder %s845_s21, 0 }
   0xc   : > { %p42_p3 = scmp.ne.s32.totalorder %s837_s19, %s833_s18  ;;  %p1106_p4 = scmp.eq.s32.totalorder %s908_s22, 0 }
   0xd   : > { %s924_s27 = scalar_select %p27_p1, %s841_s20, %s29_s25  }
   0xe   : > { %p926_p5 = por %p37_p2, %p36_p0  ;;  %p932_p6 = por %p1106_p4, %p42_p3 }
   0xf   : > { %p150_p7 = scmp.eq.s32.totalorder %s908_s22, 1  ;;  %p156_p8 = scmp.eq.s32.totalorder %s529_s23, 1 }
  0x10   : > { %p530_p9 = scmp.ge.s32.totalorder %s845_s21, 1  ;;  %p163_p10 = scmp.lt.s32.totalorder %s845_s21, 3 }
  0x11   : > { %p939_p11 = por %p150_p7, %p36_p0  ;;  %p943_p12 = por %p156_p8, %p42_p3 }
  0x12   : > { %p947_p13 = pnand %p530_p9, %p163_p10  ;;  %s1113_s1 = sld [smem:[#allocation12_spill]] }
  0x13   : > { %s1111_s6 = scalar_select %p943_p12, 1, 0 }
  0x14   : > { %p599_p1 = pneg %p947_p13  ;;  %s847_s11 = smov [#allocation5]  }
  0x15   : > { %s176_s12 = sshll.u32 %s847_s11, 4  ;;  %s191_s15 = sshll.u32 %s1101_s3, 4  ;;  %s177_s12 = int_to_ptr.vmem [resolvable:$true] %s176_s12  ;;  %s192_s15 = int_to_ptr.hbm [resolvable:$true] %s191_s15 }
  0x16   : > { %p600_p0 = pnand %p599_p1, %p1106_p4  ;;  %s848_s16 = smov 64  }
  0x17   : > { %s849_s17 = smov 4   ;;  %s850_s23 = smov [#allocation7]  }
  0x18   : > { %s174_s10 = sshll.u32 %s1113_s1, 4  ;;  %s193_s25 = sshll.u32 %s850_s23, 4  ;;  %s175_s10 = int_to_ptr.hbm [resolvable:$true] %s174_s10  ;;  %s194_s25 = int_to_ptr.vmem [resolvable:$true] %s193_s25 }
  0x19   : > { %602 = dma.hbm_to_vmem [thread:$0]  (!%p600_p0), %s175_s10, 256, %s177_s12, [#allocation6], %s848_s16, %s848_s16, %s849_s17  }
  0x1a   : > { %605 = dma.hbm_to_vmem [thread:$0]  (!%p600_p0), %s192_s15, 512, %s194_s25, [#allocation6], %s848_s16, %s848_s16, %s849_s17  }
  0x1b   : > { %p1105_p2 = scmp.ge.s32.totalorder %s845_s21, 2 }
  0x1d   : > { %206 = sbr.rel (%p1105_p2) target bundleno = 71 (0x47), region = 32 }
  0x22   : > { %209 = sbr.rel (!%p926_p5) target bundleno = 71 (0x47), region = 36  ;;  %s210_s26 = sand.u32 (%p926_p5), 1, %s841_s20  }
  0x23   : > { %s535_s8 = sshll.u32 (%p926_p5), %s845_s21, 1  ;;  %s534_s9 = sshll.u32 (%p926_p5), %s210_s26, 4 }
  0x24   : > { %s216_s11 = ssub.s32 (%p926_p5), 3, %s535_s8  ;;  %s971_s14 = scalar_lea.sflag (%p926_p5), [#allocation3], %s210_s26 }
  0x25   : > { %p217_p3 = scmp.lt.s32.totalorder (%p926_p5), %s216_s11, 2  ;;  %s214_s15 = scalar_lea.vmem (%p926_p5), [#allocation2], %s534_s9 }
  0x27   : > { %s1126_s11 = smov (!%p217_p3, %s216_s11), 2 }
  0x28   : > { %s536_s10 = sshll.u32 %s1126_s11, 3 }
  0x29   : > { %s220_s12 = ssub.s32 16, %s536_s10 }
  0x2a   : > { %s221_s13 = sshll.u32 %s220_s12, 4 }
  0x2b   : > { %222 = vsyncadd %s971_s14, %s221_s13  ;;  %p974_p5 = scmp.ne.s32.totalorder %s536_s10, 0  ;;  %s581_s16 = sshll.u32 %s845_s21, 4 }
  0x2c   : > { %s225_s25 = scalar_lea.hbm %s1098_s0, %s581_s16  ;;  %s982_s8 = sshll.u32 %s214_s15, 4  ;;  %s230_s8 = int_to_ptr.vmem [resolvable:$true] %s982_s8 }
  0x2d   : > { %s227_s26 = sshll.u32 %s225_s25, 4  ;;  %s1104_s9 = sshll.u32 %s1126_s11, 7  ;;  %s985_s26 = int_to_ptr.hbm [resolvable:$true] %s227_s26 }
  0x2e   : > { %s725_s12 = sshra.s32 %s985_s26, 4  ;;  %s727_s10 = sshrl.u32 %s1104_s9, 4  ;;  %s726_s12 = int_to_ptr.hbm [resolvable:$true] %s725_s12 }
  0x2f   : > { %s732_s13 = scalar_lea.hbm %s726_s12, %s727_s10  ;;  %s736_s15 = scalar_lea.hbm %s1098_s0, 24 }
  0x30   : > { %p733_p7 = scmp.ne.s32.totalorder %s726_s12, %s732_s13  ;;  %p737_p10 = scmp.lt.s32.totalorder %s726_s12, %s1098_s0 }
  0x31   : > { %p738_p1 = scmp.lt.s32.totalorder %s736_s15, %s732_s13 }
  0x32   : > { %p734_p8 = pnand %p733_p7, %p974_p5 }
  0x33   : > { %p739_p0 = por %p738_p1, %p737_p10 }
  0x34   : > { %p735_p9 = pneg %p734_p8 }
  0x36   : > { %p740_p3 = pnand %p739_p0, %p735_p9 }
  0x38   : > { %743 = shalt.err (!%p740_p3)
}
  0x39   : > { %s744_s9 = sshra.s32 %s230_s8, 4  ;;  %s851_s17 = smov [#allocation2]   ;;  %s745_s9 = int_to_ptr.vmem [resolvable:$true] %s744_s9 }
  0x3a   : > { %s751_s1 = scalar_lea.vmem %s745_s9, %s727_s10  ;;  %s755_s16 = scalar_lea.vmem %s851_s17, 32 }
  0x3b   : > { %p752_p7 = scmp.ne.s32.totalorder %s745_s9, %s751_s1  ;;  %p757_p4 = scmp.lt.s32.totalorder %s755_s16, %s751_s1 }
  0x3d   : > { %p753_p8 = pnand %p752_p7, %p974_p5 }
  0x3f   : > { %p754_p2 = pneg %p753_p8 }
  0x41   : > { %p759_p12 = pnand %p757_p4, %p754_p2 }
  0x43   : > { %762 = shalt.err (!%p759_p12)
}
  0x44   : > { %s852_s12 = smov 128   ;;  %s853_s13 = smov 8  }
  0x45   : > { %s1115_s15 = sshll.u32 %s1126_s11, 7 }
  0x46   : > { %235 = dma.hbm_to_vmem [thread:$0]  (%p974_p5), %s985_s26, %s1115_s15, %s230_s8, %s971_s14, %s852_s12, %s852_s12, %s853_s13  }
  0x47 PF: > { %241 = sbr.rel (%p947_p13) target bundleno = 648 (0x288), region = 40  ;;  %s1014_s1 = sand.u32 (!%p947_p13), 1, %s837_s19  }
  0x48   : > { %s542_s9 = sshll.u32 (!%p947_p13), %s1014_s1, 4  ;;  %s244_s10 = scalar_lea.sflag (!%p947_p13), [#allocation3], %s1014_s1 }
  0x49   : > { %s247_s23 = scalar_lea.vmem (!%p947_p13), [#allocation2], %s542_s9 }
  0x4c   : > { %820 = dma.done.wait (%p932_p6), %s244_s10, 256  }
  0x4d   : > { %822 = vsyncadd (%p932_p6), %s244_s10, 4294967040  ;;  %p1116_p4 = scmp.eq.s32.totalorder %s908_s22, 0 }
  0x4f   : > { %824 = dma.done.wait (%p1116_p4), [#allocation6], 768   ;;  %p1117_p12 = pmov %p1116_p4 }
  0x50   : > { %v583_v0 = vld [vmem:[#allocation5 + $0x8] sm:$0xff]  ;;  %v582_v1 = vld [vmem:[#allocation5] sm:$0xff]  ;;  %vm319_vm0 = vcmask 261120   ;;  %v585_v7 = vld [vmem:[#allocation7 + $0x8] sm:$0xff]  ;;  %vm376_vm1 = vcmask 523264   ;;  %s284_s28 = scalar_lea.vmem [#allocation8], %s542_s9 }
  0x51   : > { %826 = vsyncadd (%p1117_p12), [#allocation6], 4294966528  ;;  %329 = vmatpush.bf16.msra.mxu0 %v583_v0  ;;  %v296_v2 = vld [vmem:[%s247_s23] sm:$0xff]  ;;  %v297_v3 = vld [vmem:[%s247_s23 + $0x8] sm:$0xff]  ;;  %s415_s8 = scalar_lea.sflag [#allocation4], %s1014_s1  ;;  %s573_s26 = sshll.u32 (%p939_p11), %s908_s22, 1 }
  0x52   : > { %v298_v4 = vpack.c.bf16 %v297_v3, %v296_v2  ;;  %v587_v5 = vld [vmem:[#allocation7 + $0x18] sm:$0xff]  ;;  %v586_v6 = vld [vmem:[#allocation7 + $0x10] sm:$0xff]  ;;  %v584_v8 = vld [vmem:[#allocation7] sm:$0xff]  ;;  %s423_s25 = ssub.s32 (%p939_p11), 3, %s573_s26 }
  0x53   : > { %384 = vmatpush.bf16.msra.mxu1 %v587_v5  ;;  %v655_v10 = vld [vmem:[%s1100_s2] ss:$0 sm:$0xff]  ;;  %p424_p6 = scmp.lt.s32.totalorder (%p939_p11), %s423_s25, 2 }
  0x54   : > { %v656_v17 = vld [vmem:[%s1102_s4] ss:$0 sm:$0xff] }
  0x55   : > { %330 = vmatpush.bf16.msra.mxu0 %v582_v1 }
  0x57   : > { %385 = vmatpush.bf16.msra.mxu1 %v586_v6 }
  0x58   : > { %554 = vmatmul.msk.bf16.vlgmr.msra.gmra.mxu0 %vm319_vm0, %v298_v4 }
  0x5b   : > { %386 = vmatpush.bf16.msra.mxu1 %v585_v7 }
  0x5f   : > { %387 = vmatpush.bf16.msra.mxu1 %v584_v8 }
  0xd5   : > { %v332_v9 = vpop.f32.mrf.mxu0 }
  0xd6   : > { %v333_v11 = vadd.f32 %v655_v10, %v332_v9 }
  0xd8   : > { %v337_v14 = vmax.f32 %v333_v11, 0.0 }
  0xdd   : > { %v334_v12 = vpop.f32.mrf.mxu0 }
  0xde   : > { %v335_v13 = vadd.f32 %v655_v10, %v334_v12 }
  0xe0   : > { %v338_v15 = vmax.f32 %v335_v13, 0.0 }
  0xe2   : > { %v339_v16 = vpack.c.bf16 %v338_v15, %v337_v14 }
  0xe4   : > { %571 = vmatmul.msk.bf16.vlgmr.msra.gmra.mxu1 %vm376_vm1, %v339_v16 }
 0x161   : > { %v389_v18 = vpop.f32.mrf.mxu1 }
 0x162   : > { %v390_v19 = vadd.f32 %v656_v17, %v389_v18 }
 0x164   : > { %394 = vmax.xlane.f32.xlu0 %v390_v19 }
 0x169   : > { %v391_v20 = vpop.f32.mrf.mxu1 }
 0x16a   : > { %v392_v21 = vadd.f32 %v656_v17, %v391_v20 }
 0x16c   : > { %396 = vmax.xlane.f32.xlu0 %v392_v21 }
 0x1d7   : > { %v395_v22 = vpop.xlane.xlu0 %394 }
 0x1d8   : > { %v398_v23 = vsub.f32 %v390_v19, %v395_v22 }
 0x1da   : > { %v400_v24 = vmul.f32 1.442695, %v398_v23 }
 0x1dc   : > { %657 = vpow2.f32 %v400_v24 }
 0x1df   : > { %v397_v25 = vpop.xlane.xlu0 %396 }
 0x1e0   : > { %v399_v26 = vsub.f32 %v392_v21, %v397_v25 }
 0x1e2   : > { %v658_v27 = vpop.eup %657  ;;  %v402_v28 = vmul.f32 1.442695, %v399_v26 }
 0x1e3   : > { %404 = vadd.xlane.f32.xlu1 %v658_v27 }
 0x1e4   : > { %659 = vpow2.f32 %v402_v28 }
 0x1ea   : > { %v660_v29 = vpop.eup %659 }
 0x1eb   : > { %406 = vadd.xlane.f32.xlu1 %v660_v29 }
 0x256   : > { %v405_v30 = vpop.xlane.xlu1 %404 }
 0x257   : > { %661 = vrcp.f32 %v405_v30 }
 0x25d   : > { %v662_v31 = vpop.eup %661 }
 0x25e   : > { %v410_v32 = vmul.f32 %v662_v31, %v658_v27  ;;  %v407_v33 = vpop.xlane.xlu1 %406 }
 0x25f   : > { %663 = vrcp.f32 %v407_v33 }
 0x260   : > { %412 = vst [vmem:[%s284_s28] sm:$0xff] %v410_v32 }
 0x264   : > { %421 = sbr.rel (!%p939_p11) target bundleno = 648 (0x288), region = 56 }
 0x265   : > { %v664_v34 = vpop.eup %663 }
 0x266   : > { %v411_v35 = vmul.f32 %v664_v34, %v660_v29 }
 0x268   : > { %413 = vst [vmem:[%s284_s28 + $0x8] sm:$0xff] %v411_v35 }
 0x269   : > { %s1128_s25 = smov (!%p424_p6, %s423_s25), 2 }
 0x26a   : > { %s574_s17 = sshll.u32 %s1128_s25, 3 }
 0x26b   : > { %s427_s16 = ssub.s32 16, %s574_s17 }
 0x26c   : > { %s428_s12 = sshll.u32 %s427_s16, 4 }
 0x26d   : > { %429 = vsyncadd %s415_s8, %s428_s12  ;;  %p1045_p13 = scmp.ne.s32.totalorder %s574_s17, 0  ;;  %s588_s30 = sshll.u32 %s908_s22, 4 }
 0x26e   : > { %s432_s10 = scalar_lea.hbm %s1103_s5, %s588_s30  ;;  %s434_s23 = sshll.u32 %s284_s28, 4  ;;  %s1053_s23 = int_to_ptr.vmem [resolvable:$true] %s434_s23 }
 0x26f   : > { %s436_s29 = sshll.u32 %s432_s10, 4  ;;  %s578_s7 = sshll.u32 %s1128_s25, 7  ;;  %s1055_s29 = int_to_ptr.hbm [resolvable:$true] %s436_s29 }
 0x270   : > { %s764_s11 = sshra.s32 %s1053_s23, 4  ;;  %s766_s14 = sshrl.u32 %s578_s7, 4  ;;  %s765_s11 = int_to_ptr.vmem [resolvable:$true] %s764_s11 }
 0x271   : > { %s771_s26 = scalar_lea.vmem %s765_s11, %s766_s14  ;;  %s854_s22 = smov [#allocation8]  }
 0x272   : > { %p772_p11 = scmp.ne.s32.totalorder %s765_s11, %s771_s26  ;;  %s775_s17 = scalar_lea.vmem %s854_s22, 32 }
 0x273   : > { %p777_p9 = scmp.lt.s32.totalorder %s775_s17, %s771_s26 }
 0x274   : > { %p773_p2 = pnand %p772_p11, %p1045_p13 }
 0x276   : > { %p774_p5 = pneg %p773_p2 }
 0x278   : > { %p779_p10 = pnand %p777_p9, %p774_p5 }
 0x27a   : > { %782 = shalt.err (!%p779_p10)
}
 0x27b   : > { %s783_s28 = sshra.s32 %s1055_s29, 4  ;;  %s794_s15 = scalar_lea.hbm %s1103_s5, 24  ;;  %s784_s28 = int_to_ptr.hbm [resolvable:$true] %s783_s28 }
 0x27c   : > { %s790_s16 = scalar_lea.hbm %s784_s28, %s766_s14  ;;  %p795_p7 = scmp.lt.s32.totalorder %s784_s28, %s1103_s5 }
 0x27d   : > { %p791_p1 = scmp.ne.s32.totalorder %s784_s28, %s790_s16  ;;  %p796_p8 = scmp.lt.s32.totalorder %s794_s15, %s790_s16 }
 0x27f   : > { %p792_p0 = pnand %p791_p1, %p1045_p13  ;;  %p797_p4 = por %p796_p8, %p795_p7 }
 0x281   : > { %p793_p3 = pneg %p792_p0 }
 0x283   : > { %p798_p12 = pnand %p797_p4, %p793_p3 }
 0x285   : > { %801 = shalt.err (!%p798_p12)
}
 0x286   : > { %s855_s11 = smov 128   ;;  %s856_s14 = smov 8  }
 0x287   : > { %442 = dma.vmem_to_hbm [thread:$0]  (%p1045_p13), %s1053_s23, %s578_s7, %s1055_s29, %s415_s8, %s855_s11, %s855_s11, %s856_s14  }
 0x288 PF: > { %s451_s26 = sand.u32 1, %s833_s18   ;;  %p1119_p6 = scmp.ne.s32.totalorder %s1111_s6, 0 }
 0x289   : > { %p1120_p11 = scmp.ge.s32.totalorder %s845_s21, 2  ;;  %s452_s22 = scalar_lea.sflag [#allocation4], %s451_s26 }
 0x28b   : > { %p607_p2 = pnand %p1120_p11, %p1119_p6 }
 0x28d   : > { %p608_p5 = pneg %p607_p2 }
 0x28f   : > { %828 = dma.done.wait (%p608_p5), %s452_s22, 256  }
 0x290   : > { %830 = vsyncadd (%p608_p5), %s452_s22, 4294967040  ;;  %p19_p9 = scmp.ge.s32.totalorder %s912_s24, 4   ;;  %s1121_s18 = smov %s837_s19 }
 0x291   : > { %s1122_s19 = smov %s841_s20  ;;  %s1123_s20 = smov %s924_s27 }
 0x292   : > { %s1124_s21 = smov %s912_s24  ;;  %21 = sbr.rel (!%p19_p9) target bundleno = 8 (0x8), region = 93 }
 0x297   :  { %458 = vsyncpa [#allocation3], 1 }
 0x298   :  { %460 = vsyncpa [#allocation3 + $0x1], 1 }
 0x299   :  { %461 = vsyncpa [#allocation6], 1 }
 0x29a   :  { %462 = vsyncpa [#allocation4], 1 }
 0x29b   :  { %464 = vsyncpa [#allocation4 + $0x1], 1 }

</bundles_post_ra>
